<compile_context>
chip_gen: v7x
topology: tpu7x:2x2x1
jax: 0.10.0
libtpu: 0.0.40
codegen_flags: <defaults>
</compile_context>

<pallas_src>
import jax
import jax.numpy as jnp
from jax.experimental import pallas as pl
from jax.experimental.pallas import tpu as pltpu


def _round_up(x, m):
    return (x + m - 1) // m * m


def _pick_tile(dim, unit, target):
    """Largest tile (multiple of `unit`, <= target) minimizing padding of `dim`.

    Ties are broken in favour of the larger tile.  `dim` is first rounded up
    to `unit` (hardware alignment), so the returned tile never forces more
    padding than that mandatory alignment when a divisor exists.
    """
    dim_aligned = _round_up(max(dim, 1), unit)
    target = max(unit, min(target, dim_aligned))
    best, best_pad = unit, _round_up(dim_aligned, unit) - dim
    t = unit
    while t <= target:
        pad = _round_up(dim_aligned, t) - dim
        if pad < best_pad or (pad == best_pad and t > best):
            best, best_pad = t, pad
        t += unit
    return best


def _vmem_caps():
    """(vmem_limit_bytes to request, budget for our tile working set)."""
    try:
        cap = int(pltpu.get_tpu_info().vmem_capacity_bytes)
    except Exception:
        cap = 64 * 1024 * 1024          # conservative: v7x per-core VMEM
    limit = max(int(cap * 0.75), 32 * 1024 * 1024)
    budget = int(limit * 0.8)
    return limit, budget


def _pad2(a, rows, cols):
    pr, pc = rows - a.shape[0], cols - a.shape[1]
    if pr or pc:
        a = jnp.pad(a, ((0, pr), (0, pc)))
    return a


# ---------------------------------------------------------------------------
# Kernels
# ---------------------------------------------------------------------------

def _fast_glu_kernel_fused_k(x_ref, wv_ref, wg_ref, bv_ref, bg_ref, o_ref):
    """Single K pass (tk == padded D): no scratch, bias + sigmoid fused."""
    wv = wv_ref[...]
    wg = wg_ref[...]
    x = x_ref[...].astype(wv.dtype)             # in-kernel cast (VPU, cheap)
    v = jnp.dot(x, wv, preferred_element_type=jnp.float32) + bv_ref[...]
    g = jnp.dot(x, wg, preferred_element_type=jnp.float32) + bg_ref[...]
    sig = pl.reciprocal(1.0 + jnp.exp(-g), approx=True)   # EUP slot
    o_ref[...] = (v * sig).astype(o_ref.dtype)


def _fast_glu_kernel_split_k(x_ref, wv_ref, wg_ref, bv_ref, bg_ref, o_ref,
                             acc_v_ref, acc_g_ref):
    """Split-K: f32 accumulators seeded with bias, sigmoid in the epilogue."""
    k = pl.program_id(2)

    @pl.when(k == 0)
    def _():
        acc_v_ref[...] = jnp.broadcast_to(bv_ref[...], acc_v_ref.shape)
        acc_g_ref[...] = jnp.broadcast_to(bg_ref[...], acc_g_ref.shape)

    wv = wv_ref[...]
    x = x_ref[...].astype(wv.dtype)
    acc_v_ref[...] += jnp.dot(x, wv, preferred_element_type=jnp.float32)
    acc_g_ref[...] += jnp.dot(x, wg_ref[...],
                              preferred_element_type=jnp.float32)

    @pl.when(k == pl.num_programs(2) - 1)
    def _():
        g = acc_g_ref[...]
        sig = pl.reciprocal(1.0 + jnp.exp(-g), approx=True)
        o_ref[...] = (acc_v_ref[...] * sig).astype(o_ref.dtype)


# ---------------------------------------------------------------------------
# One-time weight preparation (hoisted out of the per-call path)
# ---------------------------------------------------------------------------

def prepare_fast_glu_params(w, b, *, compute_dtype=jnp.bfloat16,
                            tn_target=512, tk_target=4096):
    """Pre-transpose / pad / cast nn.Linear(D, 2D) weights once.

    w: [2D, D] (PyTorch Linear convention), b: [2D].
    Returns a dict holding the value/gate weight halves in [Dk, Dn] layout
    plus the (tn, tk) feature-tiling plan the apply step will use.
    """
    two_d, D = w.shape
    assert two_d == 2 * D and b.shape == (2 * D,)
    compute_dtype = jnp.dtype(compute_dtype)
    _, budget = _vmem_caps()

    tn = _pick_tile(D, 128, tn_target)
    tk = _pick_tile(D, 128, tk_target)
    # Keep the two (double-buffered) weight tiles within ~half the budget so
    # the apply step has room for X / output / accumulator tiles (v7x: 64 MiB
    # physical VMEM, so this matters for large D).
    wbytes = compute_dtype.itemsize
    while tk > 128 and 2 * 2 * tk * tn * wbytes > budget // 2:
        tk //= 2
    tk = _pick_tile(D, 128, tk)

    Dn = _round_up(D, tn)
    Dk = _round_up(D, tk)

    wv = _pad2(w[:D, :].T, Dk, Dn).astype(compute_dtype)     # value half
    wg = _pad2(w[D:, :].T, Dk, Dn).astype(compute_dtype)     # gate half
    bv = _pad2(b[:D].reshape(1, D).astype(jnp.float32), 1, Dn)
    bg = _pad2(b[D:].reshape(1, D).astype(jnp.float32), 1, Dn)

    # TODO(synk): optional fp8 weight storage for v7x inference paths (needs
    # per-channel scaling) is not implemented.
    return dict(wv=wv, wg=wg, bv=bv, bg=bg, D=D, tn=tn, tk=tk,
                compute_dtype=compute_dtype)


# ---------------------------------------------------------------------------
# Per-call apply
# ---------------------------------------------------------------------------

def fast_glu_apply(x, params, *, tm_target=512, out_dtype=None,
                   weight_buffers=2):
    """x: [B, D]; params: output of prepare_fast_glu_params."""
    B, D = x.shape
    assert D == params["D"], "feature dim mismatch with prepared params"
    out_dtype = x.dtype if out_dtype is None else jnp.dtype(out_dtype)

    wv, wg, bv, bg = params["wv"], params["wg"], params["bv"], params["bg"]
    cdt = params["compute_dtype"]
    tn, tk = params["tn"], params["tk"]
    Dk, Dn = wv.shape
    nk = Dk // tk

    vmem_limit, budget = _vmem_caps()

    # Row tile: minimize padding of B, capped by tm_target.
    tm = _pick_tile(B, 8, tm_target)

    # Megacore (v7x has 2 TCs): keep >= 2 parallel M x N tiles when possible.
    def _n_parallel():
        return (_round_up(B, tm) // tm) * (Dn // tn)
    while _n_parallel() < 2 and tn % 256 == 0:
        tn //= 2                      # stays a multiple of 128, divides Dn
    while _n_parallel() < 2 and tm % 16 == 0:
        tm //= 2                      # stays a multiple of 8

    nn_tiles = Dn // tn

    # Cast X in the wrapper only when several N tiles re-read it; otherwise
    # keep the original dtype and cast per-tile in the kernel.
    cast_in_wrapper = (nn_tiles > 1) and (x.dtype != cdt)
    x_kernel_dtype = cdt if cast_in_wrapper else x.dtype

    def _est_vmem(tm_, tn_, tk_):
        xi = jnp.dtype(x_kernel_dtype).itemsize
        wi = cdt.itemsize
        oi = out_dtype.itemsize
        nb_w = max(2, weight_buffers)
        bts = 2 * tm_ * tk_ * xi                 # X tile (double-buffered)
        bts += 2 * nb_w * tk_ * tn_ * wi         # Wv + Wg tiles
        bts += 2 * tm_ * tn_ * oi                # output tile
        bts += 4 * 2 * tn_ * 4                   # bias tiles (tiny)
        if nk > 1:
            bts += 2 * tm_ * tn_ * 4             # f32 accumulators
        return bts

    while _est_vmem(tm, tn, tk) > budget and tm % 16 == 0:
        tm //= 2

    Bp = _round_up(B, tm)
    nm = Bp // tm

    xp = _pad2(x, Bp, Dk)
    if cast_in_wrapper:
        xp = xp.astype(cdt)

    if weight_buffers != 2:
        def _w_spec(idx_map):
            return pl.BlockSpec((tk, tn), idx_map,
                                pipeline_mode=pl.Buffered(weight_buffers))
    else:
        def _w_spec(idx_map):
            return pl.BlockSpec((tk, tn), idx_map)

    cost = pl.CostEstimate(
        flops=4 * B * D * D + 6 * B * D,
        transcendentals=B * D,
        bytes_accessed=(
            xp.size * xp.dtype.itemsize * nn_tiles          # X re-read per N tile
            + (wv.size + wg.size) * cdt.itemsize * nm       # W re-streamed per M tile
            + (bv.size + bg.size) * 4
            + Bp * Dn * out_dtype.itemsize),
    )

    if nk == 1:
        grid = (nm, nn_tiles)
        grid_spec = pltpu.PrefetchScalarGridSpec(
            num_scalar_prefetch=0,
            grid=grid,
            in_specs=[
                pl.BlockSpec((tm, tk), lambda i, j: (i, 0)),    # X tile
                _w_spec(lambda i, j: (0, j)),                   # W_val^T tile
                _w_spec(lambda i, j: (0, j)),                   # W_gate^T tile
                pl.BlockSpec((1, tn), lambda i, j: (0, j)),     # b_val tile
                pl.BlockSpec((1, tn), lambda i, j: (0, j)),     # b_gate tile
            ],
            out_specs=pl.BlockSpec((tm, tn), lambda i, j: (i, j)),
        )
        kernel = _fast_glu_kernel_fused_k
        dims = ("parallel", "parallel")
    else:
        grid = (nm, nn_tiles, nk)
        grid_spec = pltpu.PrefetchScalarGridSpec(
            num_scalar_prefetch=0,
            grid=grid,
            in_specs=[
                pl.BlockSpec((tm, tk), lambda i, j, k: (i, k)),
                _w_spec(lambda i, j, k: (k, j)),
                _w_spec(lambda i, j, k: (k, j)),
                pl.BlockSpec((1, tn), lambda i, j, k: (0, j)),
                pl.BlockSpec((1, tn), lambda i, j, k: (0, j)),
            ],
            out_specs=pl.BlockSpec((tm, tn), lambda i, j, k: (i, j)),
            scratch_shapes=[
                pltpu.VMEM((tm, tn), jnp.float32),              # value acc
                pltpu.VMEM((tm, tn), jnp.float32),              # gate acc
            ],
        )
        kernel = _fast_glu_kernel_split_k
        dims = ("parallel", "parallel", "arbitrary")

    out = pl.pallas_call(
        kernel,
        out_shape=jax.ShapeDtypeStruct((Bp, Dn), out_dtype),
        grid_spec=grid_spec,
        compiler_params=pltpu.CompilerParams(
            dimension_semantics=dims,
            vmem_limit_bytes=int(vmem_limit)),
        cost_estimate=cost,
    )(xp, wv, wg, bv, bg)

    return out[:B, :D]


def fast_glu(x, w, b, *, compute_dtype=jnp.bfloat16, tm_target=512,
             tn_target=512, tk_target=4096, out_dtype=None, weight_buffers=2):
    """Convenience one-shot path.  For repeated calls, hoist
    prepare_fast_glu_params out of the loop and call fast_glu_apply."""
    params = prepare_fast_glu_params(w, b, compute_dtype=compute_dtype,
                                     tn_target=tn_target, tk_target=tk_target)
    return fast_glu_apply(x, params, tm_target=tm_target, out_dtype=out_dtype,
                          weight_buffers=weight_buffers)


def fast_glu_ref(x, w, b):
    d = x.shape[1]
    y = x @ w.T + b
    return y[:, :d] * jax.nn.sigmoid(y[:, d:])


if __name__ == "__main__":
    key = jax.random.PRNGKey(0)
    k_small, k_big = jax.random.split(key)

    # ---- small shape matching the module (batch=16, in_size=32) ----------
    B, D = 16, 32
    kx, kw, kb = jax.random.split(k_small, 3)
    x = jax.random.normal(kx, (B, D), dtype=jnp.float32)
    bound = 1.0 / (D ** 0.5)        # nn.Linear's uniform(-1/sqrt(D), 1/sqrt(D))
    w = jax.random.uniform(kw, (2 * D, D), minval=-bound, maxval=bound,
                           dtype=jnp.float32)
    b = jax.random.uniform(kb, (2 * D,), minval=-bound, maxval=bound,
                           dtype=jnp.float32)
    ref = fast_glu_ref(x, w, b)

    # Hoisted-weight path, f32 MXU inputs (tolerance covers the EUP
    # approx-reciprocal in the sigmoid epilogue).
    params_f32 = prepare_fast_glu_params(w, b, compute_dtype=jnp.float32)
    out_f32 = jax.block_until_ready(fast_glu_apply(x, params_f32))
    assert out_f32.shape == (B, D)
    assert jnp.allclose(out_f32, ref, atol=3e-2, rtol=3e-2), "f32 path mismatch"

    # Default path: bf16 MXU inputs, weights prepared once (hoisted).
    params_bf16 = prepare_fast_glu_params(w, b)          # bf16 by default
    out_bf16 = jax.block_until_ready(fast_glu_apply(x, params_bf16))
    assert out_bf16.shape == (B, D)
    assert jnp.allclose(out_bf16, ref, atol=6e-2, rtol=6e-2), "bf16 path mismatch"

    # Convenience one-shot wrapper should match the hoisted bf16 path.
    out_once = jax.block_until_ready(fast_glu(x, w, b))
    assert jnp.allclose(out_once, out_bf16, atol=1e-5, rtol=1e-5)

    # ---- second shape exercising the split-K (multi-K, multi-N) kernel ----
    B2, D2 = 24, 256
    kx2, kw2, kb2 = jax.random.split(k_big, 3)
    x2 = jax.random.normal(kx2, (B2, D2), dtype=jnp.float32)
    bound2 = 1.0 / (D2 ** 0.5)
    w2 = jax.random.uniform(kw2, (2 * D2, D2), minval=-bound2, maxval=bound2,
                            dtype=jnp.float32)
    b2 = jax.random.uniform(kb2, (2 * D2,), minval=-bound2, maxval=bound2,
                            dtype=jnp.float32)
    ref2 = fast_glu_ref(x2, w2, b2)
    params2 = prepare_fast_glu_params(w2, b2, compute_dtype=jnp.float32,
                                      tn_target=128, tk_target=128)
    out2 = jax.block_until_ready(fast_glu_apply(x2, params2, tm_target=128))
    assert out2.shape == (B2, D2)
    assert jnp.allclose(out2, ref2, atol=3e-2, rtol=3e-2), "split-K mismatch"

    print("KERNEL_OK")
</pallas_src>

<mosaic_0001>
module attributes {stable_mosaic.version = 11 : i64} {
  func.func @_fast_glu_kernel_fused_k(%arg0: i32, %arg1: i32, %arg2: memref<8x128xf32, #tpu.memory_space<vmem>>, %arg3: memref<128x128xf32, #tpu.memory_space<vmem>>, %arg4: memref<128x128xf32, #tpu.memory_space<vmem>>, %arg5: memref<1x128xf32, #tpu.memory_space<vmem>>, %arg6: memref<1x128xf32, #tpu.memory_space<vmem>>, %arg7: memref<8x128xf32, #tpu.memory_space<vmem>>) attributes {dimension_semantics = [#tpu.dimension_semantics<parallel>, #tpu.dimension_semantics<parallel>], iteration_bounds = array<i64: 2, 1>, scalar_prefetch = 0 : i64, scratch_operands = 0 : i64, tpu.core_type = #tpu.core_type<tc>, window_params = [{transform_indices = @transform_0, window_bounds = array<i64: 8, 128>}, {transform_indices = @transform_1, window_bounds = array<i64: 128, 128>}, {transform_indices = @transform_2, window_bounds = array<i64: 128, 128>}, {transform_indices = @transform_3, window_bounds = array<i64: 1, 128>}, {transform_indices = @transform_4, window_bounds = array<i64: 1, 128>}, {transform_indices = @transform_5, window_bounds = array<i64: 8, 128>}]} {
    %c0 = arith.constant 0 : index
    %c0_0 = arith.constant 0 : index
    %0 = vector.load %arg3[%c0, %c0_0] : memref<128x128xf32, #tpu.memory_space<vmem>>, vector<128x128xf32>
    %c0_1 = arith.constant 0 : index
    %c0_2 = arith.constant 0 : index
    %1 = vector.load %arg4[%c0_1, %c0_2] : memref<128x128xf32, #tpu.memory_space<vmem>>, vector<128x128xf32>
    %c0_3 = arith.constant 0 : index
    %c0_4 = arith.constant 0 : index
    %2 = vector.load %arg2[%c0_3, %c0_4] : memref<8x128xf32, #tpu.memory_space<vmem>>, vector<8x128xf32>
    %cst = arith.constant dense<0.000000e+00> : vector<8x128xf32>
    %3 = tpu.matmul %2, %0, %cst {dimension_numbers = #tpu.dot_dimension_numbers<[1], [0], [0], [1], [0, 0, 1, 1], [], []>} : vector<8x128xf32>, vector<128x128xf32>, vector<8x128xf32> -> vector<8x128xf32>
    %c0_5 = arith.constant 0 : index
    %c0_6 = arith.constant 0 : index
    %4 = vector.load %arg5[%c0_5, %c0_6] : memref<1x128xf32, #tpu.memory_space<vmem>>, vector<1x128xf32>
    %5 = vector.broadcast %4 : vector<1x128xf32> to vector<8x128xf32>
    %6 = arith.addf %3, %5 : vector<8x128xf32>
    %cst_7 = arith.constant dense<0.000000e+00> : vector<8x128xf32>
    %7 = tpu.matmul %2, %1, %cst_7 {dimension_numbers = #tpu.dot_dimension_numbers<[1], [0], [0], [1], [0, 0, 1, 1], [], []>} : vector<8x128xf32>, vector<128x128xf32>, vector<8x128xf32> -> vector<8x128xf32>
    %c0_8 = arith.constant 0 : index
    %c0_9 = arith.constant 0 : index
    %8 = vector.load %arg6[%c0_8, %c0_9] : memref<1x128xf32, #tpu.memory_space<vmem>>, vector<1x128xf32>
    %9 = vector.broadcast %8 : vector<1x128xf32> to vector<8x128xf32>
    %10 = arith.addf %7, %9 : vector<8x128xf32>
    %cst_10 = arith.constant 0.000000e+00 : f32
    %11 = vector.broadcast %cst_10 : f32 to vector<8x128xf32>
    %12 = arith.subf %11, %10 : vector<8x128xf32>
    %13 = math.exp %12 : vector<8x128xf32>
    %cst_11 = arith.constant 1.000000e+00 : f32
    %14 = vector.broadcast %cst_11 : f32 to vector<8x128xf32>
    %15 = arith.addf %14, %13 : vector<8x128xf32>
    %16 = tpu.reciprocal %15 {approx = true} : vector<8x128xf32> -> vector<8x128xf32>
    %17 = arith.mulf %6, %16 : vector<8x128xf32>
    %c0_12 = arith.constant 0 : index
    %c0_13 = arith.constant 0 : index
    %18 = vector.load %arg7[%c0_12, %c0_13] : memref<8x128xf32, #tpu.memory_space<vmem>>, vector<8x128xf32>
    tpu.vector_store %arg7[%c0_12, %c0_13], %17 {strides = array<i32>} : memref<8x128xf32, #tpu.memory_space<vmem>>, vector<8x128xf32>,
    return
  }
  func.func @transform_0(%arg0: i32, %arg1: i32) -> (i32, i32) {
    %c0_i32 = arith.constant 0 : i32
    %c0_i32_0 = arith.constant 0 : i32
    return %arg0, %c0_i32 : i32, i32
  }
  func.func @transform_1(%arg0: i32, %arg1: i32) -> (i32, i32) {
    %c0_i32 = arith.constant 0 : i32
    %c0_i32_0 = arith.constant 0 : i32
    return %c0_i32, %arg1 : i32, i32
  }
  func.func @transform_2(%arg0: i32, %arg1: i32) -> (i32, i32) {
    %c0_i32 = arith.constant 0 : i32
    %c0_i32_0 = arith.constant 0 : i32
    return %c0_i32, %arg1 : i32, i32
  }
  func.func @transform_3(%arg0: i32, %arg1: i32) -> (i32, i32) {
    %c0_i32 = arith.constant 0 : i32
    %c0_i32_0 = arith.constant 0 : i32
    return %c0_i32, %arg1 : i32, i32
  }
  func.func @transform_4(%arg0: i32, %arg1: i32) -> (i32, i32) {
    %c0_i32 = arith.constant 0 : i32
    %c0_i32_0 = arith.constant 0 : i32
    return %c0_i32, %arg1 : i32, i32
  }
  func.func @transform_5(%arg0: i32, %arg1: i32) -> (i32, i32) {
    %c0_i32 = arith.constant 0 : i32
    return %arg0, %arg1 : i32, i32
  }
}

</mosaic_0001>

<bundles_post_ra>
// kernel: tpu_custom_call.1
= control target key start
LH: loop header
LB: loop body
LE: loop exit
PB: predicated region body
PF: predicated region fallthrough
CT: control target
= control target key end

     0   :  { %10 = vsyncpa [#allocation3], 0  ;;  %s1417_s0 = inlined_call_operand.hbm [shape: f32[16,128], index: 0, kind: input, shape index: {}]   ;;  %s1418_s1 = inlined_call_operand.hbm [shape: f32[128,128], index: 1, kind: input, shape index: {}]   ;;  %s1419_s2 = inlined_call_operand.hbm [shape: f32[128,128], index: 2, kind: input, shape index: {}]   ;;  %s1420_s3 = inlined_call_operand.vmem [shape: f32[1,128], index: 3, kind: input, shape index: {}]   ;;  %s1421_s4 = inlined_call_operand.vmem [shape: f32[1,128], index: 4, kind: input, shape index: {}]   ;;  %s1422_s5 = inlined_call_operand.hbm [shape: f32[16,128], index: 5, kind: output, shape index: {}]  }
   0x1   :  { %12 = vsyncpa [#allocation3 + $0x1], 0 }
   0x2   :  { %13 = vsyncpa [#allocation6], 0 }
   0x3   :  { %14 = vsyncpa [#allocation4], 0 }
   0x4   :  { %16 = vsyncpa [#allocation4 + $0x1], 0  ;;  %s1138_s18 = smov 0   ;;  %s1140_s19 = smov 0  }
   0x5   :  { %s1142_s20 = smov 0   ;;  %s1144_s21 = smov 0  }
   0x6   :  { %s1146_s22 = smov 0   ;;  %s1148_s23 = smov 0  }
   0x7 LB: > { %s660_s24 = sadd.s32 4294967295, %s1097_s23   ;;  %s661_s25 = sadd.s32 4294967294, %s1097_s23   ;;  %s1097_s23 = sphi %s1148_s23, %s22_s23   ;;  %s1093_s22 = sphi %s1146_s22, %s1444_s22   ;;  %s1089_s21 = sphi %s1144_s21, %s1443_s21   ;;  %s1085_s20 = sphi %s1142_s20, %s1442_s20   ;;  %s1081_s19 = sphi %s1140_s19, %s1441_s19   ;;  %s1077_s18 = sphi %s1138_s18, %s1440_s18  }
   0x8   : > { %p54_p0 = scmp.ne.s32.totalorder %s1081_s19, %s1077_s18  ;;  %p1172_p1 = scmp.eq.s32.totalorder %s660_s24, 0 }
   0x9   : > { %p1176_p2 = scmp.eq.s32.totalorder %s660_s24, 1  ;;  %p190_p3 = scmp.eq.s32.totalorder %s661_s25, 1 }
   0xa   : > { %s1427_s26 = scalar_select %p1172_p1, 1, 0 }
   0xb   : > { %p1182_p4 = por %p1172_p1, %p54_p0  ;;  %p662_p5 = scmp.ge.s32.totalorder %s1097_s23, 1 }
   0xc   : > { %p1187_p6 = por %p190_p3, %p54_p0  ;;  %p197_p7 = scmp.lt.s32.totalorder %s1097_s23, 3 }
   0xd   : > { %s1429_s28 = scalar_select %p1182_p4, 1, 0 }
   0xe   : > { %s1430_s29 = scalar_select %p1187_p6, 1, 0 }
   0xf   : > { %p1192_p8 = pnand %p662_p5, %p197_p7  ;;  %s1099_s6 = smov [#allocation5]  }
  0x10   : > { %s211_s7 = sshll.u32 %s1099_s6, 4  ;;  %s1100_s9 = smov [#allocation7]   ;;  %s1196_s7 = int_to_ptr.vmem [resolvable:$true] %s211_s7 }
  0x11   : > { %p845_p9 = pneg %p1192_p8  ;;  %s226_s10 = sshll.u32 %s1100_s9, 4  ;;  %s1207_s10 = int_to_ptr.vmem [resolvable:$true] %s226_s10 }
  0x12   : > { %s925_s13 = scalar_lea.hbm %s1418_s1, 2048 }
  0x13   : > { %p1203_p11 = pnand %p845_p9, %p1172_p1  ;;  %p926_p12 = scmp.ne.s32.totalorder %s1418_s1, %s925_s13 }
  0x14   : > { %p932_p5 = scmp.lt.u32.totalorder %s925_s13, %s1418_s1 }
  0x15   : > { %p927_p13 = pneg %p1203_p11 }
  0x17   : > { %p928_p0 = pnand %p927_p13, %p926_p12 }
  0x19   : > { %p929_p3 = pneg %p928_p0 }
  0x1b   : > { %p934_p7 = pnand %p932_p5, %p929_p3 }
  0x1d   : > { %937 = shalt.err (!%p934_p7)
}
  0x1e   : > { %s938_s24 = scalar_lea.vmem %s1196_s7, 2048  ;;  %p946_p1 = scmp.lt.s32.totalorder %s1196_s7, %s1196_s7 }
  0x1f   : > { %p939_p9 = scmp.ne.s32.totalorder %s1196_s7, %s938_s24  ;;  %p947_p12 = scmp.lt.s32.totalorder %s938_s24, %s938_s24 }
  0x21   : > { %p941_p10 = pnand %p939_p9, %p927_p13  ;;  %p948_p0 = por %p947_p12, %p946_p1 }
  0x23   : > { %p942_p6 = pneg %p941_p10 }
  0x25   : > { %p949_p4 = pnand %p948_p0, %p942_p6 }
  0x27   : > { %952 = shalt.err (!%p949_p4)
}
  0x28   : > { %s1101_s25 = smov 128   ;;  %s1102_s6 = smov 8  }
  0x29   : > { %848 = dma.hbm_to_vmem [thread:$0]  (!%p1203_p11), %s1418_s1, 2048, %s1196_s7, [#allocation6], %s1101_s25, %s1101_s25, %s1102_s6  }
  0x2a   : > { %s953_s14 = scalar_lea.hbm %s1419_s2, 2048 }
  0x2b   : > { %p954_p1 = scmp.ne.s32.totalorder %s1419_s2, %s953_s14  ;;  %p960_p10 = scmp.lt.u32.totalorder %s953_s14, %s1419_s2 }
  0x2d   : > { %p956_p4 = pnand %p954_p1, %p927_p13 }
  0x2f   : > { %p957_p6 = pneg %p956_p4 }
  0x31   : > { %p962_p3 = pnand %p960_p10, %p957_p6 }
  0x33   : > { %965 = shalt.err (!%p962_p3)
}
  0x34   : > { %s966_s7 = scalar_lea.vmem %s1207_s10, 2048  ;;  %p974_p12 = scmp.lt.s32.totalorder %s1207_s10, %s1207_s10 }
  0x35   : > { %p967_p5 = scmp.ne.s32.totalorder %s1207_s10, %s966_s7  ;;  %p975_p0 = scmp.lt.s32.totalorder %s966_s7, %s966_s7 }
  0x37   : > { %p969_p7 = pnand %p967_p5, %p927_p13  ;;  %p976_p1 = por %p975_p0, %p974_p12 }
  0x39   : > { %p970_p9 = pneg %p969_p7 }
  0x3b   : > { %p977_p4 = pnand %p976_p1, %p970_p9 }
  0x3d   : > { %980 = shalt.err (!%p977_p4)
}
  0x3e   : > { %851 = dma.hbm_to_vmem [thread:$0]  (!%p1203_p11), %s1419_s2, 2048, %s1207_s10, [#allocation6], %s1101_s25, %s1101_s25, %s1102_s6  }
  0x3f   : > { %s34_s12 = sadd.s32 1, %s1093_s22  ;;  %s41_s13 = sadd.s32 1, %s1085_s20 }
  0x40   : > { %p36_p13 = scmp.ge.s32.totalorder %s34_s12, 2  ;;  %p48_p6 = scmp.ne.s32.totalorder %s1085_s20, %s1081_s19 }
  0x41   : > { %p49_p10 = scmp.eq.s32.totalorder %s1097_s23, 0  ;;  %p862_p3 = scmp.lt.s32.totalorder %s1097_s23, 2 }
  0x42   : > { %s1446_s12 = smov (%p36_p13, %s34_s12), 0  ;;  %p1271_p7 = por %p1176_p2, %p48_p6 }
  0x43   : > { %p50_p5 = por %p49_p10, %p48_p6  ;;  %s38_s14 = ssub.s32 %s1093_s22, %s1446_s12 }
  0x44   : > { %s1433_s8 = scalar_select %p1271_p7, 1, 0 }
  0x45   : > { %s252_s15 = sand.u32 1, %s1085_s20   ;;  %p39_p9 = scmp.eq.s32.totalorder %s38_s14, 0 }
  0x46   : > { %s668_s10 = sshll.u32 %s252_s15, 3  ;;  %s669_s25 = sshll.u32 %s1093_s22, 7 }
  0x47   : > { %s1280_s6 = scalar_select %p39_p9, %s1085_s20, %s41_s13  }
  0x48   : > { %s1285_s24 = scalar_lea.hbm %s1417_s0, %s669_s25  ;;  %s256_s27 = scalar_lea.vmem [#allocation2], %s668_s10 }
  0x49   : > { %s263_s7 = sshll.u32 %s256_s27, 4  ;;  %p1289_p2 = pnand %p862_p3, %p50_p5  ;;  %s1293_s7 = int_to_ptr.vmem [resolvable:$true] %s263_s7 }
  0x4a   : > { %s253_s11 = scalar_lea.sflag [#allocation3], %s252_s15  ;;  %s981_s13 = scalar_lea.hbm %s1285_s24, 128 }
  0x4b   : > { %p982_p11 = scmp.ne.s32.totalorder %s1285_s24, %s981_s13  ;;  %p983_p12 = pneg %p1289_p2 }
  0x4c   : > { %s986_s25 = scalar_lea.hbm %s1417_s0, 256  ;;  %p987_p4 = scmp.lt.u32.totalorder %s1285_s24, %s1417_s0 }
  0x4d   : > { %p984_p0 = pnand %p983_p12, %p982_p11  ;;  %p988_p13 = scmp.lt.u32.totalorder %s986_s25, %s981_s13 }
  0x4e   : > { %p990_p10 = scmp.lt.u32.totalorder %s981_s13, %s1285_s24 }
  0x4f   : > { %p985_p1 = pneg %p984_p0  ;;  %p989_p6 = por %p988_p13, %p987_p4 }
  0x51   : > { %p991_p3 = por %p990_p10, %p989_p6 }
  0x53   : > { %p992_p5 = pnand %p991_p3, %p985_p1 }
  0x55   : > { %995 = shalt.err (!%p992_p5)
}
  0x56   : > { %s996_s15 = scalar_lea.vmem %s1293_s7, 128  ;;  %s1103_s27 = smov [#allocation2]  }
  0x57   : > { %p997_p9 = scmp.ne.s32.totalorder %s1293_s7, %s996_s15  ;;  %s1001_s14 = sshll.u32 %s1103_s27, 4  ;;  %s1002_s14 = int_to_ptr.vmem [resolvable:$false] %s1001_s14 }
  0x58   : > { %s1003_s10 = scalar_lea.vmem %s1002_s14, 256  ;;  %p1004_p7 = scmp.lt.s32.totalorder %s1293_s7, %s1002_s14 }
  0x59   : > { %p999_p11 = pnand %p997_p9, %p983_p12  ;;  %p1005_p4 = scmp.lt.s32.totalorder %s1003_s10, %s996_s15 }
  0x5b   : > { %p1000_p0 = pneg %p999_p11  ;;  %p1006_p13 = por %p1005_p4, %p1004_p7 }
  0x5d   : > { %p1007_p6 = pnand %p1006_p13, %p1000_p0 }
  0x5f   : > { %1010 = shalt.err (!%p1007_p6)
}
  0x60   : > { %855 = dma.hbm_to_vmem [thread:$0]  (!%p1289_p2), %s1285_s24, 128, %s1293_s7, %s253_s11  }
  0x61   : > { %272 = sbr.rel (%p1192_p8) target bundleno = 401 (0x191), region = 40  ;;  %s1323_s13 = sand.u32 (!%p1192_p8), 1, %s1081_s19  }
  0x62   : > { %s671_s25 = sshll.u32 (!%p1192_p8), %s1323_s13, 3  ;;  %s275_s16 = scalar_lea.sflag (!%p1192_p8), [#allocation3], %s1323_s13 }
  0x63   : > { %s1329_s17 = scalar_lea.vmem (!%p1192_p8), [#allocation2], %s671_s25  ;;  %p1435_p7 = scmp.ne.s32.totalorder (!%p1192_p8), %s1429_s28, 0 }
  0x68   : > { %1064 = dma.done.wait (%p1435_p7), %s275_s16, 128  }
  0x69   : > { %1066 = vsyncadd (%p1435_p7), %s275_s16, 4294967168  ;;  %p1436_p2 = scmp.ne.s32.totalorder %s1427_s26, 0 }
  0x6b   : > { %1068 = dma.done.wait (%p1436_p2), [#allocation6], 4096  }
  0x6c   : > { %1070 = vsyncadd (%p1436_p2), [#allocation6], 4294963200  ;;  %v1104_v0 = vmov 0.0|0.0   ;;  %vm1105_vm0 = vmmov 0   ;;  %v1106_v1 = vmov 0.0   ;;  %v341_v2 = vld [vmem:[#allocation7] sm:$0xff] }
  0x6d   : > { %809 = vmatprep.subr.bf16.mxu1 %v1104_v0  ;;  %785 = vmatprep.subr.bf16.mxu0 %v1104_v0  ;;  %v342_v3 = vld [vmem:[#allocation7 + $0x8] sm:$0xff]  ;;  %v343_v4 = vld [vmem:[#allocation7 + $0x10] sm:$0xff]  ;;  %v344_v6 = vld [vmem:[#allocation7 + $0x18] sm:$0xff]  ;;  %s678_s7 = sshll.u32 %s1089_s21, 7  ;;  %s318_s9 = scalar_lea.vmem [#allocation8], %s671_s25 }
  0x6e   : > { %782 = vmatprep.mubr.msk.f32.mxu1 %vm1105_vm0, %v1106_v1  ;;  %747 = vmatprep.mubr.msk.f32.mxu0 %vm1105_vm0, %v1106_v1  ;;  %v810_v5 = vpack.c.bf16 %v342_v3, %v341_v2  ;;  %v813_v7 = vpack.c.bf16 %v344_v6, %v343_v4  ;;  %v345_v8 = vld [vmem:[#allocation7 + $0x20] sm:$0xff]  ;;  %v346_v9 = vld [vmem:[#allocation7 + $0x28] sm:$0xff]  ;;  %v327_v13 = vld [vmem:[#allocation5 + $0x10] sm:$0xff]  ;;  %s534_s11 = sshll.u32 %s318_s9, 4  ;;  %s1368_s14 = scalar_lea.hbm %s1422_s5, %s678_s7  ;;  %s1370_s11 = int_to_ptr.vmem [resolvable:$true] %s534_s11 }
  0x6f   : > { %v325_v10 = vld [vmem:[#allocation5] sm:$0xff]  ;;  %v326_v11 = vld [vmem:[#allocation5 + $0x8] sm:$0xff]  ;;  %v328_v14 = vld [vmem:[#allocation5 + $0x18] sm:$0xff]  ;;  %v816_v15 = vpack.c.bf16 %v346_v9, %v345_v8  ;;  %s520_s10 = scalar_lea.sflag [#allocation4], %s1323_s13  ;;  %s1011_s16 = scalar_lea.vmem %s1370_s11, 128 }
  0x70   : > { %811 = vmatpush3.bf16.msra.mxu1 %v810_v5  ;;  %v786_v12 = vpack.c.bf16 %v326_v11, %v325_v10  ;;  %v347_v16 = vld [vmem:[#allocation7 + $0x30] sm:$0xff]  ;;  %v348_v17 = vld [vmem:[#allocation7 + $0x38] sm:$0xff]  ;;  %v789_v18 = vpack.c.bf16 %v328_v14, %v327_v13  ;;  %v329_v19 = vld [vmem:[#allocation5 + $0x20] sm:$0xff]  ;;  %p1012_p8 = scmp.ne.s32.totalorder %s1370_s11, %s1011_s16  ;;  %p1437_p12 = scmp.ne.s32.totalorder %s1433_s8, 0 }
  0x71   : > { %812 = vmatprep.subr.bf16.mxu1 %v1104_v0  ;;  %v330_v20 = vld [vmem:[#allocation5 + $0x28] sm:$0xff]  ;;  %v819_v21 = vpack.c.bf16 %v348_v17, %v347_v16  ;;  %v349_v22 = vld [vmem:[#allocation7 + $0x40] sm:$0xff]  ;;  %v331_v25 = vld [vmem:[#allocation5 + $0x30] sm:$0xff]  ;;  %s1107_s21 = smov [#allocation8]  }
  0x72   : > { %787 = vmatpush3.bf16.msra.mxu0 %v786_v12  ;;  %v350_v23 = vld [vmem:[#allocation7 + $0x48] sm:$0xff]  ;;  %v792_v24 = vpack.c.bf16 %v330_v20, %v329_v19  ;;  %v332_v26 = vld [vmem:[#allocation5 + $0x38] sm:$0xff]  ;;  %v351_v28 = vld [vmem:[#allocation7 + $0x50] sm:$0xff]  ;;  %p1013_p1 = pnand %p1012_p8, %p1437_p12  ;;  %s1015_s25 = sshll.u32 %s1107_s21, 4  ;;  %s1016_s25 = int_to_ptr.vmem [resolvable:$false] %s1015_s25 }
  0x73   : > { %788 = vmatprep.subr.bf16.mxu0 %v1104_v0  ;;  %v822_v27 = vpack.c.bf16 %v350_v23, %v349_v22  ;;  %v352_v29 = vld [vmem:[#allocation7 + $0x58] sm:$0xff]  ;;  %v795_v30 = vpack.c.bf16 %v332_v26, %v331_v25  ;;  %v333_v31 = vld [vmem:[#allocation5 + $0x40] sm:$0xff]  ;;  %v334_v32 = vld [vmem:[#allocation5 + $0x48] sm:$0xff]  ;;  %p1018_p3 = scmp.lt.s32.totalorder %s1370_s11, %s1016_s25 }
  0x74   : > { %814 = vmatpush3.bf16.msra.mxu1 %v813_v7  ;;  %v825_v33 = vpack.c.bf16 %v352_v29, %v351_v28  ;;  %v353_v34 = vld [vmem:[#allocation7 + $0x60] sm:$0xff]  ;;  %v354_v35 = vld [vmem:[#allocation7 + $0x68] sm:$0xff]  ;;  %v798_v36 = vpack.c.bf16 %v334_v32, %v333_v31  ;;  %v335_v37 = vld [vmem:[#allocation5 + $0x50] sm:$0xff]  ;;  %p1014_p10 = pneg %p1013_p1 }
  0x75   : > { %815 = vmatprep.subr.bf16.mxu1 %v1104_v0  ;;  %v336_v38 = vld [vmem:[#allocation5 + $0x58] sm:$0xff]  ;;  %v828_v39 = vpack.c.bf16 %v354_v35, %v353_v34  ;;  %v355_v40 = vld [vmem:[#allocation7 + $0x70] sm:$0xff]  ;;  %v337_v43 = vld [vmem:[#allocation5 + $0x60] sm:$0xff] }
  0x76   : > { %790 = vmatpush3.bf16.msra.mxu0 %v789_v18  ;;  %v356_v41 = vld [vmem:[#allocation7 + $0x78] sm:$0xff]  ;;  %v801_v42 = vpack.c.bf16 %v336_v38, %v335_v37  ;;  %v338_v44 = vld [vmem:[#allocation5 + $0x68] sm:$0xff]  ;;  %v339_v47 = vld [vmem:[#allocation5 + $0x70] sm:$0xff] }
  0x77   : > { %791 = vmatprep.subr.bf16.mxu0 %v1104_v0  ;;  %v831_v45 = vpack.c.bf16 %v356_v41, %v355_v40  ;;  %v804_v46 = vpack.c.bf16 %v338_v44, %v337_v43  ;;  %v340_v48 = vld [vmem:[#allocation5 + $0x78] sm:$0xff]  ;;  %v676_v51 = vld [vmem:[%s1421_s4] ss:$0 sm:$0xff] }
  0x78   : > { %817 = vmatpush3.bf16.msra.mxu1 %v816_v15  ;;  %v357_v49 = vld [vmem:[%s1329_s17] sm:$0xff]  ;;  %v807_v50 = vpack.c.bf16 %v340_v48, %v339_v47  ;;  %s1017_s17 = scalar_lea.vmem %s1016_s25, 256 }
  0x79   : > { %818 = vmatprep.subr.bf16.mxu1 %v1104_v0  ;;  %v675_v61 = vld [vmem:[%s1420_s3] ss:$0 sm:$0xff]  ;;  %p1019_p5 = scmp.lt.s32.totalorder %s1017_s17, %s1011_s16 }
  0x7a   : > { %793 = vmatpush3.bf16.msra.mxu0 %v792_v24 }
  0x7b   : > { %794 = vmatprep.subr.bf16.mxu0 %v1104_v0  ;;  %p1020_p9 = por %p1019_p5, %p1018_p3 }
  0x7c   : > { %820 = vmatpush3.bf16.msra.mxu1 %v819_v21 }
  0x7d   : > { %821 = vmatprep.subr.bf16.mxu1 %v1104_v0  ;;  %p1021_p11 = pnand %p1020_p9, %p1014_p10 }
  0x7e   : > { %796 = vmatpush3.bf16.msra.mxu0 %v795_v30 }
  0x7f   : > { %797 = vmatprep.subr.bf16.mxu0 %v1104_v0 }
  0x80   : > { %823 = vmatpush3.bf16.msra.mxu1 %v822_v27 }
  0x81   : > { %824 = vmatprep.subr.bf16.mxu1 %v1104_v0 }
  0x82   : > { %799 = vmatpush3.bf16.msra.mxu0 %v798_v36 }
  0x83   : > { %800 = vmatprep.subr.bf16.mxu0 %v1104_v0 }
  0x84   : > { %826 = vmatpush3.bf16.msra.mxu1 %v825_v33 }
  0x85   : > { %827 = vmatprep.subr.bf16.mxu1 %v1104_v0 }
  0x86   : > { %802 = vmatpush3.bf16.msra.mxu0 %v801_v42 }
  0x87   : > { %803 = vmatprep.subr.bf16.mxu0 %v1104_v0 }
  0x88   : > { %829 = vmatpush3.bf16.msra.mxu1 %v828_v39 }
  0x89   : > { %830 = vmatprep.subr.bf16.mxu1 %v1104_v0 }
  0x8a   : > { %805 = vmatpush3.bf16.msra.mxu0 %v804_v46 }
  0x8b   : > { %806 = vmatprep.subr.bf16.mxu0 %v1104_v0 }
  0x8c   : > { %832 = vmatpush3.bf16.msra.mxu1 %v831_v45 }
  0x8e   : > { %808 = vmatpush3.bf16.msra.mxu0 %v807_v50 }
  0x8f   : > { %783 = vmatmul.mubr.f32.vlgmr.msra.gmra.mrb[0].mxu1 %v357_v49 }
  0x91   : > { %748 = vmatmul.mubr.f32.vlgmr.msra.gmra.mrb[0].mxu0 %v357_v49 }
 0x162   : > { %v508_v52 = vpop.f32.mrb[0].mxu1 }
 0x163   : > { %v509_v53 = vadd.f32 %v676_v51, %v508_v52  ;;  %v784_v54 = vpop.f32.mrb[1].mxu1 }
 0x164   : > { %v431_v57 = vpop.f32.mrb[0].mxu0 }
 0x165   : > { %v512_v55 = vsub.f32 0.0, %v509_v53  ;;  %v749_v58 = vpop.f32.mrb[1].mxu0  ;;  %v432_v62 = vadd.f32 %v675_v61, %v431_v57 }
 0x167   : > { %v513_v56 = vmul.f32 1.442695, %v512_v55 }
 0x169   : > { %921 = vpow2.f32 %v513_v56 }
 0x173   : > { %v922_v59 = vpop.eup %921 }
 0x174   : > { %v515_v60 = vadd.f32 1.0, %v922_v59 }
 0x176   : > { %923 = vrcp.f32 %v515_v60 }
 0x180   : > { %v924_v63 = vpop.eup %923 }
 0x181   : > { %v517_v0 = vmul.f32 %v924_v63, %v432_v62 }
 0x183   : > { %518 = vst [vmem:[%s318_s9] sm:$0xff] %v517_v0 }
 0x184   : > { %1024 = shalt.err (!%p1021_p11)
}
 0x185   : > { %s1025_s13 = scalar_lea.hbm %s1368_s14, 128  ;;  %s1029_s30 = scalar_lea.hbm %s1422_s5, 256 }
 0x186   : > { %p1026_p0 = scmp.ne.s32.totalorder %s1368_s14, %s1025_s13  ;;  %p1030_p6 = scmp.lt.u32.totalorder %s1368_s14, %s1422_s5 }
 0x187   : > { %p1031_p7 = scmp.lt.u32.totalorder %s1029_s30, %s1025_s13  ;;  %p1033_p8 = scmp.lt.u32.totalorder %s1025_s13, %s1368_s14 }
 0x188   : > { %p1027_p4 = pnand %p1026_p0, %p1437_p12 }
 0x189   : > { %p1032_p2 = por %p1031_p7, %p1030_p6 }
 0x18a   : > { %p1028_p13 = pneg %p1027_p4 }
 0x18b   : > { %p1034_p1 = por %p1033_p8, %p1032_p2 }
 0x18d   : > { %p1035_p10 = pnand %p1034_p1, %p1028_p13 }
 0x18f   : > { %1038 = shalt.err (!%p1035_p10)
}
 0x190   : > { %843 = dma.vmem_to_hbm [thread:$0]  (%p1437_p12), %s1370_s11, 128, %s1368_s14, %s520_s10  }
 0x191 PF: > { %s546_s9 = sand.u32 1, %s1077_s18   ;;  %p1438_p3 = scmp.ne.s32.totalorder %s1430_s29, 0 }
 0x192   : > { %p1439_p5 = scmp.ge.s32.totalorder %s1097_s23, 2  ;;  %s547_s15 = scalar_lea.sflag [#allocation4], %s546_s9 }
 0x194   : > { %p857_p9 = pnand %p1439_p5, %p1438_p3 }
 0x196   : > { %1072 = dma.done.wait (!%p857_p9), %s547_s15, 128  }
 0x197   : > { %1074 = vsyncadd (!%p857_p9), %s547_s15, 4294967168  ;;  %s22_s23 = sadd.s32 1, %s1097_s23   ;;  %s1440_s18 = smov %s1081_s19 }
 0x198   : > { %p19_p11 = scmp.ge.s32.totalorder %s22_s23, 4   ;;  %s1441_s19 = smov %s1085_s20 }
 0x199   : > { %s1442_s20 = smov %s1280_s6  ;;  %s1443_s21 = smov %s1093_s22 }
 0x19a   : > { %s1444_s22 = smov %s1446_s12  ;;  %21 = sbr.rel (!%p19_p11) target bundleno = 7 (0x7), region = 101 }
 0x1a1   :  { %552 = vsyncpa [#allocation3], 1 }
 0x1a2   :  { %554 = vsyncpa [#allocation3 + $0x1], 1 }
 0x1a3   :  { %555 = vsyncpa [#allocation6], 1 }
 0x1a4   :  { %556 = vsyncpa [#allocation4], 1 }
 0x1a5   :  { %558 = vsyncpa [#allocation4 + $0x1], 1 }

</bundles_post_ra>
